<compile_context>
chip_gen: v7x
topology: tpu7x:2x2x1
jax: 0.10.0
libtpu: 0.0.40
codegen_flags: <defaults>
</compile_context>

<pallas_src>
import functools

import numpy as np
import jax
import jax.numpy as jnp
from jax import lax
from jax.experimental import pallas as pl
from jax.experimental.pallas import tpu as pltpu


LANE = 128
SUB = 8  # one f32 vreg = (8, 128)


def _round_up(x, m):
    return ((x + m - 1) // m) * m


def _detection_loss_kernel(pred_ref, tgt_ref, o_ref, acc_ref, *, n_chunks,
                           gridsize, num_boxes, num_classes, coord_scale,
                           noobject_scale):
    # pred_ref / tgt_ref: (C, t_sub, 128) lane-dense channel slabs.
    # o_ref:   (1, 8, 128) f32 partial-sum output block (one per outer index).
    # acc_ref: (8, 128) f32 VMEM accumulator, resident across the inner axis.
    inner = pl.program_id(1)

    @pl.when(inner == 0)
    def _init():
        acc_ref[...] = jnp.zeros_like(acc_ref)

    f32 = jnp.float32
    inv_g = 1.0 / float(gridsize)

    def chunk_body(s, carry):
        row = pl.multiple_of(s * SUB, SUB)

        def p_ch(c):   # predicted channel c -> (8, 128) f32
            return pred_ref[c, pl.ds(row, SUB), :].astype(f32)

        def t_ch(c):   # target channel c -> (8, 128) f32
            return tgt_ref[c, pl.ds(row, SUB), :].astype(f32)

        # Target box 0 of every cell (IoU reference box for all pred boxes).
        t0, t1, t2, t3, t4 = t_ch(0), t_ch(1), t_ch(2), t_ch(3), t_ch(4)
        t_cx = t0 * inv_g
        t_cy = t1 * inv_g
        t_hw = 0.5 * t2
        t_hh = 0.5 * t3
        t_x1 = t_cx - t_hw
        t_x2 = t_cx + t_hw
        t_y1 = t_cy - t_hh
        t_y2 = t_cy + t_hh
        t_area = (t_x2 - t_x1) * (t_y2 - t_y1)

        # Running first-argmax over boxes (strict > keeps the first maximum,
        # like np.argmax / torch.max) + the loss the winning box contributes.
        best_iou = jnp.full_like(t_area, -1.0)
        best_cost = jnp.zeros_like(t_area)
        noobj_term = jnp.zeros_like(t_area)

        for j in range(num_boxes):          # statically unrolled (num_boxes==3)
            b = 5 * j
            px = p_ch(b + 0)
            py = p_ch(b + 1)
            pw = p_ch(b + 2)
            ph = p_ch(b + 3)
            pc = p_ch(b + 4)
            if j == 0:
                tx, ty, tw, th, tc = t0, t1, t2, t3, t4
            else:
                tx = t_ch(b + 0)
                ty = t_ch(b + 1)
                tw = t_ch(b + 2)
                th = t_ch(b + 3)
                tc = t_ch(b + 4)

            # No-object confidence MSE for this box's confidence column.
            dconf = pc - tc
            noobj_term = noobj_term + dconf * dconf

            # IoU(pred box j, target box 0).
            p_cx = px * inv_g
            p_cy = py * inv_g
            p_hw = 0.5 * pw
            p_hh = 0.5 * ph
            p_x1 = p_cx - p_hw
            p_x2 = p_cx + p_hw
            p_y1 = p_cy - p_hh
            p_y2 = p_cy + p_hh
            iw = jnp.maximum(jnp.minimum(p_x2, t_x2) - jnp.maximum(p_x1, t_x1), 0.0)
            ih = jnp.maximum(jnp.minimum(p_y2, t_y2) - jnp.maximum(p_y1, t_y1), 0.0)
            inter = iw * ih
            p_area = (p_x2 - p_x1) * (p_y2 - p_y1)
            denom = p_area + t_area - inter
            # Guard zero-area / padded boxes so 0-masked cells cannot NaN.
            # Exact divide on purpose: approx reciprocal could flip the
            # near-tied responsible-box argmax (correctness review).
            iou = inter / jnp.maximum(denom, 1e-12)

            # Loss this box would contribute if it is the responsible box.
            dx = px - tx
            dy = py - ty
            pw_c = jnp.maximum(pw, 0.0)
            tw_c = jnp.maximum(tw, 0.0)
            ph_c = jnp.maximum(ph, 0.0)
            th_c = jnp.maximum(th, 0.0)
            # (sqrt a - sqrt b)^2 == a + b - 2*sqrt(a*b): 2 sqrts/box, not 4.
            wh_term = (pw_c + tw_c - 2.0 * jnp.sqrt(pw_c * tw_c)
                       + ph_c + th_c - 2.0 * jnp.sqrt(ph_c * th_c))
            dcont = pc - iou
            cost_j = (coord_scale * (dx * dx + dy * dy + wh_term)
                      + dcont * dcont)

            better = iou > best_iou
            best_iou = jnp.where(better, iou, best_iou)
            best_cost = jnp.where(better, cost_j, best_cost)

        obj = (t4 == 1.0).astype(f32)     # object cells
        noobj = (t4 == 0.0).astype(f32)   # no-object cells (padding=-1 -> neither)

        c0 = 5 * num_boxes
        class_term = jnp.zeros_like(t4)
        for c in range(num_classes):      # statically unrolled
            d = p_ch(c0 + c) - t_ch(c0 + c)
            class_term = class_term + d * d

        # Per-cell fused scalar; accumulate with VPU adds only (no XLU here).
        # (not_contain_loss of the reference is computed there but unused.)
        term = obj * (best_cost + class_term) + noobject_scale * (noobj * noobj_term)
        return carry + term

    acc_ref[...] += lax.fori_loop(0, n_chunks, chunk_body,
                                  jnp.zeros((SUB, LANE), jnp.float32))

    @pl.when(inner == pl.num_programs(1) - 1)
    def _finalize():
        o_ref[0] = acc_ref[...]


def detection_loss(output, target, *, num_classes=2, num_boxes=3, gridsize=7,
                   coord_scale=5.0, noobject_scale=0.5, max_tile_rows=None):
    ch = 5 * num_boxes + num_classes
    out = jnp.reshape(output, (-1, gridsize, gridsize, ch))
    # matches torch: target.permute(0, 3, 1, 2) -> channels-last (B, S, S, C)
    tgt = jnp.transpose(target, (0, 3, 1, 2))
    n_batch = out.shape[0]
    n_cells = n_batch * gridsize * gridsize
    out_flat = out.reshape(n_cells, ch)
    tgt_flat = tgt.reshape(n_cells, ch)

    # --- generation-aware sublane tile (DMA tile, NOT the compute tile) ---
    try:
        vmem_cap = int(pltpu.get_tpu_info().vmem_capacity_bytes)
    except Exception:
        vmem_cap = 64 << 20  # conservative (v7x per-TC)
    budget = min(vmem_cap // 2, 40 << 20)           # for double-buffered inputs
    row_bytes = 2 * 2 * ch * LANE * 4               # 2 inputs x 2 buffers, f32
    t_sub_max = max(SUB, min(512, (budget // row_bytes) // SUB * SUB))
    if max_tile_rows is not None:                   # test hook
        t_sub_max = max(SUB, min(t_sub_max, _round_up(max_tile_rows, SUB)))

    nt_min = max(1, -(-n_cells // LANE))
    t_sub = min(t_sub_max, _round_up(nt_min, SUB))  # small problems -> 1 tile
    nt = _round_up(nt_min, t_sub)
    n_tiles = nt // t_sub

    # Megacore split (v7x has 2 TCs); only when it costs no extra padding.
    # TODO(synk): make this core-count aware instead of the even-tile rule.
    n_outer = 2 if (n_tiles >= 2 and n_tiles % 2 == 0) else 1
    n_inner = n_tiles // n_outer

    n_pad_cells = nt * LANE
    pad = n_pad_cells - n_cells
    out_p = jnp.pad(out_flat, ((0, pad), (0, 0)))
    tgt_p = jnp.pad(tgt_flat, ((0, pad), (0, 0)))
    if pad:
        # Padded cells: confidence -1 -> neither object nor no-object.
        tgt_p = tgt_p.at[n_cells:, 4].set(-1.0)

    # Channels-first, lane-dense (C, nt, 128) so every channel op is full vregs.
    out_cf = jnp.transpose(out_p, (1, 0)).reshape(ch, nt, LANE)
    tgt_cf = jnp.transpose(tgt_p, (1, 0)).reshape(ch, nt, LANE)

    block_bytes = ch * t_sub * LANE * 4
    vmem_limit = int(min(vmem_cap * 3 // 4,
                         max(32 << 20, 4 * block_bytes + (8 << 20))))

    kernel = functools.partial(
        _detection_loss_kernel, n_chunks=t_sub // SUB, gridsize=gridsize,
        num_boxes=num_boxes, num_classes=num_classes,
        coord_scale=coord_scale, noobject_scale=noobject_scale)

    in_map = lambda o, i: (0, o * n_inner + i, 0)
    partials = pl.pallas_call(
        kernel,
        out_shape=jax.ShapeDtypeStruct((n_outer, SUB, LANE), jnp.float32),
        grid_spec=pltpu.PrefetchScalarGridSpec(
            num_scalar_prefetch=0,
            grid=(n_outer, n_inner),
            in_specs=[pl.BlockSpec((ch, t_sub, LANE), in_map),
                      pl.BlockSpec((ch, t_sub, LANE), in_map)],
            out_specs=pl.BlockSpec((1, SUB, LANE), lambda o, i: (o, 0, 0)),
            scratch_shapes=[pltpu.VMEM((SUB, LANE), jnp.float32)]),
        compiler_params=pltpu.CompilerParams(
            dimension_semantics=("parallel", "arbitrary"),
            vmem_limit_bytes=vmem_limit),
    )(out_cf, tgt_cf)

    # Single cross-lane reduction + 1/n_batch scale outside the kernel.
    return jnp.sum(partials) * (1.0 / float(n_batch))


# ---------------- numpy reference mirroring the torch forward ----------------
def _iou_np(box1, box2):
    lt = np.maximum(box1[:, None, :2], box2[None, :, :2])
    rb = np.minimum(box1[:, None, 2:], box2[None, :, 2:])
    wh = np.clip(rb - lt, 0, None)
    inter = wh[:, :, 0] * wh[:, :, 1]
    a1 = (box1[:, 2] - box1[:, 0]) * (box1[:, 3] - box1[:, 1])
    a2 = (box2[:, 2] - box2[:, 0]) * (box2[:, 3] - box2[:, 1])
    return inter / (a1[:, None] + a2[None, :] - inter)


def reference_loss(output, target, num_classes=2, num_boxes=3, gridsize=7):
    ch = 5 * num_boxes + num_classes
    out = output.astype(np.float32).reshape(-1, gridsize, gridsize, ch)
    tgt = np.transpose(target.astype(np.float32), (0, 3, 1, 2))
    nB = out.shape[0]
    obj = tgt[:, :, :, 4] == 1
    noobj = tgt[:, :, :, 4] == 0
    obj_pred, obj_tgt = out[obj].reshape(-1, ch), tgt[obj].reshape(-1, ch)
    bbox_pred = obj_pred[:, :5 * num_boxes].reshape(-1, 5)
    bbox_tgt = obj_tgt[:, :5 * num_boxes].reshape(-1, 5)
    class_loss = np.sum((obj_pred[:, 5 * num_boxes:] - obj_tgt[:, 5 * num_boxes:]) ** 2)
    conf_cols = [5 * (i + 1) - 1 for i in range(num_boxes)]
    nop, nots = out[noobj].reshape(-1, ch), tgt[noobj].reshape(-1, ch)
    noobj_conf_loss = np.sum((nop[:, conf_cols] - nots[:, conf_cols]) ** 2)
    n = bbox_tgt.shape[0]
    resp = np.zeros(n, dtype=bool)
    box_iou = np.zeros(n, dtype=np.float32)
    for i in range(0, n, num_boxes):
        b1 = bbox_pred[i:i + num_boxes]
        b1x = np.zeros((num_boxes, 4), np.float32)
        b1x[:, :2] = b1[:, :2] / gridsize - 0.5 * b1[:, 2:4]
        b1x[:, 2:4] = b1[:, :2] / gridsize + 0.5 * b1[:, 2:4]
        b2 = bbox_tgt[i:i + 1]
        b2x = np.zeros((1, 4), np.float32)
        b2x[:, :2] = b2[:, :2] / gridsize - 0.5 * b2[:, 2:4]
        b2x[:, 2:4] = b2[:, :2] / gridsize + 0.5 * b2[:, 2:4]
        iou = _iou_np(b1x, b2x)[:, 0]
        mi = int(np.argmax(iou))
        resp[i + mi] = True
        box_iou[i + mi] = iou[mi]
    pr, trr = bbox_pred[resp], bbox_tgt[resp]
    xy = np.sum((pr[:, :2] - trr[:, :2]) ** 2)
    wh = np.sum((np.sqrt(pr[:, 2:4]) - np.sqrt(trr[:, 2:4])) ** 2)
    contain = np.sum((pr[:, 4] - box_iou[resp]) ** 2)
    return (5.0 * (xy + wh) + contain + 0.5 * noobj_conf_loss + class_loss) / nB


def _make_inputs(key, B, S, NBOX, NCLS):
    CH = 5 * NBOX + NCLS
    k1, k2, k3 = jax.random.split(key, 3)
    # predictions positive so sqrt(w), sqrt(h) is well defined (as torch assumes)
    output = jax.random.uniform(k1, (B, S, S, CH), jnp.float32, 0.05, 0.95)
    tgt_cl = jax.random.uniform(k2, (B, S, S, CH), jnp.float32, 0.1, 0.9)
    obj_cells = jax.random.bernoulli(k3, 0.2, (B, S, S)).astype(jnp.float32)
    for j in range(NBOX):
        tgt_cl = tgt_cl.at[:, :, :, 5 * j + 4].set(obj_cells)
    # present it in the layout the module expects: permute(0,3,1,2) -> (B,S,S,CH)
    target = jnp.transpose(tgt_cl, (0, 2, 3, 1))  # (B, S, CH, S)
    return output, target


if __name__ == "__main__":
    S, NBOX, NCLS = 7, 3, 2
    key = jax.random.PRNGKey(0)
    k_a, k_b = jax.random.split(key)

    # 1) Small problem -> single-tile fast path.
    out_a, tgt_a = _make_inputs(k_a, 2, S, NBOX, NCLS)
    loss_a = jax.block_until_ready(jax.jit(detection_loss)(out_a, tgt_a))
    ref_a = reference_loss(np.asarray(out_a), np.asarray(tgt_a))
    assert np.isfinite(float(loss_a))
    assert np.allclose(float(loss_a), ref_a, rtol=1e-3, atol=1e-4), (float(loss_a), ref_a)

    # 2) Multi-tile path (tiny forced tile) -> exercises accumulation, padding,
    #    and the 2-way "parallel" outer split.
    out_b, tgt_b = _make_inputs(k_b, 64, S, NBOX, NCLS)
    loss_b = jax.block_until_ready(
        jax.jit(lambda o, t: detection_loss(o, t, max_tile_rows=8))(out_b, tgt_b))
    ref_b = reference_loss(np.asarray(out_b), np.asarray(tgt_b))
    assert np.isfinite(float(loss_b))
    assert np.allclose(float(loss_b), ref_b, rtol=1e-3, atol=1e-4), (float(loss_b), ref_b)

    print("KERNEL_OK")
</pallas_src>

<mosaic_0001>
module attributes {stable_mosaic.version = 11 : i64} {
  func.func @_detection_loss_kernel(%arg0: i32, %arg1: i32, %arg2: memref<17x8x128xf32, #tpu.memory_space<vmem>>, %arg3: memref<17x8x128xf32, #tpu.memory_space<vmem>>, %arg4: memref<1x8x128xf32, #tpu.memory_space<vmem>>, %arg5: memref<8x128xf32, #tpu.memory_space<vmem>>) attributes {dimension_semantics = [#tpu.dimension_semantics<parallel>, #tpu.dimension_semantics<arbitrary>], iteration_bounds = array<i64: 1, 1>, scalar_prefetch = 0 : i64, scratch_operands = 1 : i64, tpu.core_type = #tpu.core_type<tc>, window_params = [{transform_indices = @transform_0, window_bounds = array<i64: 17, 8, 128>}, {transform_indices = @transform_1, window_bounds = array<i64: 17, 8, 128>}, {transform_indices = @transform_2, window_bounds = array<i64: 1, 8, 128>}]} {
    %c0_i32 = arith.constant 0 : i32
    %0 = arith.cmpi eq, %arg1, %c0_i32 : i32
    %1 = arith.extui %0 : i1 to i32
    %c0_i32_0 = arith.constant 0 : i32
    %2 = arith.cmpi ne, %1, %c0_i32_0 : i32
    scf.if %2 {
      %cst_112 = arith.constant 0.000000e+00 : f32
      %360 = vector.broadcast %cst_112 : f32 to vector<8x128xf32>
      %c0_113 = arith.constant 0 : index
      %c0_114 = arith.constant 0 : index
      %361 = vector.load %arg5[%c0_113, %c0_114] : memref<8x128xf32, #tpu.memory_space<vmem>>, vector<8x128xf32>
      tpu.vector_store %arg5[%c0_113, %c0_114], %360 {strides = array<i32>} : memref<8x128xf32, #tpu.memory_space<vmem>>, vector<8x128xf32>,
    } else {
    }
    %c0 = arith.constant 0 : index
    %c0_1 = arith.constant 0 : index
    %3 = vector.load %arg5[%c0, %c0_1] : memref<8x128xf32, #tpu.memory_space<vmem>>, vector<8x128xf32>
    %cst = arith.constant 0.000000e+00 : f32
    %4 = vector.broadcast %cst : f32 to vector<8x128xf32>
    %c0_i32_2 = arith.constant 0 : i32
    %c8_i32 = arith.constant 8 : i32
    %5 = arith.muli %c0_i32_2, %c8_i32 : i32
    %6 = tpu.assume_multiple %5, 8 : i32
    %c0_3 = arith.constant 0 : index
    %7 = arith.index_cast %6 : i32 to index
    %c0_4 = arith.constant 0 : index
    %8 = vector.load %arg3[%c0_3, %7, %c0_4] : memref<17x8x128xf32, #tpu.memory_space<vmem>>, vector<1x8x128xf32>
    %9 = vector.shape_cast %8 : vector<1x8x128xf32> to vector<8x128xf32>
    %c1 = arith.constant 1 : index
    %10 = arith.index_cast %6 : i32 to index
    %c0_5 = arith.constant 0 : index
    %11 = vector.load %arg3[%c1, %10, %c0_5] : memref<17x8x128xf32, #tpu.memory_space<vmem>>, vector<1x8x128xf32>
    %12 = vector.shape_cast %11 : vector<1x8x128xf32> to vector<8x128xf32>
    %c2 = arith.constant 2 : index
    %13 = arith.index_cast %6 : i32 to index
    %c0_6 = arith.constant 0 : index
    %14 = vector.load %arg3[%c2, %13, %c0_6] : memref<17x8x128xf32, #tpu.memory_space<vmem>>, vector<1x8x128xf32>
    %15 = vector.shape_cast %14 : vector<1x8x128xf32> to vector<8x128xf32>
    %c3 = arith.constant 3 : index
    %16 = arith.index_cast %6 : i32 to index
    %c0_7 = arith.constant 0 : index
    %17 = vector.load %arg3[%c3, %16, %c0_7] : memref<17x8x128xf32, #tpu.memory_space<vmem>>, vector<1x8x128xf32>
    %18 = vector.shape_cast %17 : vector<1x8x128xf32> to vector<8x128xf32>
    %c4 = arith.constant 4 : index
    %19 = arith.index_cast %6 : i32 to index
    %c0_8 = arith.constant 0 : index
    %20 = vector.load %arg3[%c4, %19, %c0_8] : memref<17x8x128xf32, #tpu.memory_space<vmem>>, vector<1x8x128xf32>
    %21 = vector.shape_cast %20 : vector<1x8x128xf32> to vector<8x128xf32>
    %cst_9 = arith.constant 0.142857149 : f32
    %22 = vector.broadcast %cst_9 : f32 to vector<8x128xf32>
    %23 = arith.mulf %9, %22 : vector<8x128xf32>
    %cst_10 = arith.constant 0.142857149 : f32
    %24 = vector.broadcast %cst_10 : f32 to vector<8x128xf32>
    %25 = arith.mulf %12, %24 : vector<8x128xf32>
    %cst_11 = arith.constant 5.000000e-01 : f32
    %26 = vector.broadcast %cst_11 : f32 to vector<8x128xf32>
    %27 = arith.mulf %26, %15 : vector<8x128xf32>
    %cst_12 = arith.constant 5.000000e-01 : f32
    %28 = vector.broadcast %cst_12 : f32 to vector<8x128xf32>
    %29 = arith.mulf %28, %18 : vector<8x128xf32>
    %30 = arith.subf %23, %27 : vector<8x128xf32>
    %31 = arith.addf %23, %27 : vector<8x128xf32>
    %32 = arith.subf %25, %29 : vector<8x128xf32>
    %33 = arith.addf %25, %29 : vector<8x128xf32>
    %34 = arith.subf %31, %30 : vector<8x128xf32>
    %35 = arith.subf %33, %32 : vector<8x128xf32>
    %36 = arith.mulf %34, %35 : vector<8x128xf32>
    %cst_13 = arith.constant -1.000000e+00 : f32
    %37 = vector.broadcast %cst_13 : f32 to vector<8x128xf32>
    %cst_14 = arith.constant 0.000000e+00 : f32
    %38 = vector.broadcast %cst_14 : f32 to vector<8x128xf32>
    %cst_15 = arith.constant 0.000000e+00 : f32
    %39 = vector.broadcast %cst_15 : f32 to vector<8x128xf32>
    %c0_16 = arith.constant 0 : index
    %40 = arith.index_cast %6 : i32 to index
    %c0_17 = arith.constant 0 : index
    %41 = vector.load %arg2[%c0_16, %40, %c0_17] : memref<17x8x128xf32, #tpu.memory_space<vmem>>, vector<1x8x128xf32>
    %42 = vector.shape_cast %41 : vector<1x8x128xf32> to vector<8x128xf32>
    %c1_18 = arith.constant 1 : index
    %43 = arith.index_cast %6 : i32 to index
    %c0_19 = arith.constant 0 : index
    %44 = vector.load %arg2[%c1_18, %43, %c0_19] : memref<17x8x128xf32, #tpu.memory_space<vmem>>, vector<1x8x128xf32>
    %45 = vector.shape_cast %44 : vector<1x8x128xf32> to vector<8x128xf32>
    %c2_20 = arith.constant 2 : index
    %46 = arith.index_cast %6 : i32 to index
    %c0_21 = arith.constant 0 : index
    %47 = vector.load %arg2[%c2_20, %46, %c0_21] : memref<17x8x128xf32, #tpu.memory_space<vmem>>, vector<1x8x128xf32>
    %48 = vector.shape_cast %47 : vector<1x8x128xf32> to vector<8x128xf32>
    %c3_22 = arith.constant 3 : index
    %49 = arith.index_cast %6 : i32 to index
    %c0_23 = arith.constant 0 : index
    %50 = vector.load %arg2[%c3_22, %49, %c0_23] : memref<17x8x128xf32, #tpu.memory_space<vmem>>, vector<1x8x128xf32>
    %51 = vector.shape_cast %50 : vector<1x8x128xf32> to vector<8x128xf32>
    %c4_24 = arith.constant 4 : index
    %52 = arith.index_cast %6 : i32 to index
    %c0_25 = arith.constant 0 : index
    %53 = vector.load %arg2[%c4_24, %52, %c0_25] : memref<17x8x128xf32, #tpu.memory_space<vmem>>, vector<1x8x128xf32>
    %54 = vector.shape_cast %53 : vector<1x8x128xf32> to vector<8x128xf32>
    %55 = arith.subf %54, %21 : vector<8x128xf32>
    %56 = arith.mulf %55, %55 : vector<8x128xf32>
    %57 = arith.addf %39, %56 : vector<8x128xf32>
    %cst_26 = arith.constant 0.142857149 : f32
    %58 = vector.broadcast %cst_26 : f32 to vector<8x128xf32>
    %59 = arith.mulf %42, %58 : vector<8x128xf32>
    %cst_27 = arith.constant 0.142857149 : f32
    %60 = vector.broadcast %cst_27 : f32 to vector<8x128xf32>
    %61 = arith.mulf %45, %60 : vector<8x128xf32>
    %cst_28 = arith.constant 5.000000e-01 : f32
    %62 = vector.broadcast %cst_28 : f32 to vector<8x128xf32>
    %63 = arith.mulf %62, %48 : vector<8x128xf32>
    %cst_29 = arith.constant 5.000000e-01 : f32
    %64 = vector.broadcast %cst_29 : f32 to vector<8x128xf32>
    %65 = arith.mulf %64, %51 : vector<8x128xf32>
    %66 = arith.subf %59, %63 : vector<8x128xf32>
    %67 = arith.addf %59, %63 : vector<8x128xf32>
    %68 = arith.subf %61, %65 : vector<8x128xf32>
    %69 = arith.addf %61, %65 : vector<8x128xf32>
    %70 = arith.minimumf %67, %31 : vector<8x128xf32>
    %71 = arith.maximumf %66, %30 : vector<8x128xf32>
    %72 = arith.subf %70, %71 : vector<8x128xf32>
    %cst_30 = arith.constant 0.000000e+00 : f32
    %73 = vector.broadcast %cst_30 : f32 to vector<8x128xf32>
    %74 = arith.maximumf %72, %73 : vector<8x128xf32>
    %75 = arith.minimumf %69, %33 : vector<8x128xf32>
    %76 = arith.maximumf %68, %32 : vector<8x128xf32>
    %77 = arith.subf %75, %76 : vector<8x128xf32>
    %cst_31 = arith.constant 0.000000e+00 : f32
    %78 = vector.broadcast %cst_31 : f32 to vector<8x128xf32>
    %79 = arith.maximumf %77, %78 : vector<8x128xf32>
    %80 = arith.mulf %74, %79 : vector<8x128xf32>
    %81 = arith.subf %67, %66 : vector<8x128xf32>
    %82 = arith.subf %69, %68 : vector<8x128xf32>
    %83 = arith.mulf %81, %82 : vector<8x128xf32>
    %84 = arith.addf %83, %36 : vector<8x128xf32>
    %85 = arith.subf %84, %80 : vector<8x128xf32>
    %cst_32 = arith.constant 9.99999996E-13 : f32
    %86 = vector.broadcast %cst_32 : f32 to vector<8x128xf32>
    %87 = arith.maximumf %85, %86 : vector<8x128xf32>
    %88 = arith.divf %80, %87 : vector<8x128xf32>
    %89 = arith.subf %42, %9 : vector<8x128xf32>
    %90 = arith.subf %45, %12 : vector<8x128xf32>
    %cst_33 = arith.constant 0.000000e+00 : f32
    %91 = vector.broadcast %cst_33 : f32 to vector<8x128xf32>
    %92 = arith.maximumf %48, %91 : vector<8x128xf32>
    %cst_34 = arith.constant 0.000000e+00 : f32
    %93 = vector.broadcast %cst_34 : f32 to vector<8x128xf32>
    %94 = arith.maximumf %15, %93 : vector<8x128xf32>
    %cst_35 = arith.constant 0.000000e+00 : f32
    %95 = vector.broadcast %cst_35 : f32 to vector<8x128xf32>
    %96 = arith.maximumf %51, %95 : vector<8x128xf32>
    %cst_36 = arith.constant 0.000000e+00 : f32
    %97 = vector.broadcast %cst_36 : f32 to vector<8x128xf32>
    %98 = arith.maximumf %18, %97 : vector<8x128xf32>
    %99 = arith.addf %92, %94 : vector<8x128xf32>
    %100 = arith.mulf %92, %94 : vector<8x128xf32>
    %101 = math.sqrt %100 : vector<8x128xf32>
    %cst_37 = arith.constant 2.000000e+00 : f32
    %102 = vector.broadcast %cst_37 : f32 to vector<8x128xf32>
    %103 = arith.mulf %102, %101 : vector<8x128xf32>
    %104 = arith.subf %99, %103 : vector<8x128xf32>
    %105 = arith.addf %104, %96 : vector<8x128xf32>
    %106 = arith.addf %105, %98 : vector<8x128xf32>
    %107 = arith.mulf %96, %98 : vector<8x128xf32>
    %108 = math.sqrt %107 : vector<8x128xf32>
    %cst_38 = arith.constant 2.000000e+00 : f32
    %109 = vector.broadcast %cst_38 : f32 to vector<8x128xf32>
    %110 = arith.mulf %109, %108 : vector<8x128xf32>
    %111 = arith.subf %106, %110 : vector<8x128xf32>
    %112 = arith.subf %54, %88 : vector<8x128xf32>
    %113 = arith.mulf %89, %89 : vector<8x128xf32>
    %114 = arith.mulf %90, %90 : vector<8x128xf32>
    %115 = arith.addf %113, %114 : vector<8x128xf32>
    %116 = arith.addf %115, %111 : vector<8x128xf32>
    %cst_39 = arith.constant 5.000000e+00 : f32
    %117 = vector.broadcast %cst_39 : f32 to vector<8x128xf32>
    %118 = arith.mulf %117, %116 : vector<8x128xf32>
    %119 = arith.mulf %112, %112 : vector<8x128xf32>
    %120 = arith.addf %118, %119 : vector<8x128xf32>
    %121 = arith.cmpf ogt, %88, %37 : vector<8x128xf32>
    %122 = arith.select %121, %88, %37 : vector<8x128xi1>, vector<8x128xf32>
    %123 = arith.select %121, %120, %38 : vector<8x128xi1>, vector<8x128xf32>
    %c5 = arith.constant 5 : index
    %124 = arith.index_cast %6 : i32 to index
    %c0_40 = arith.constant 0 : index
    %125 = vector.load %arg2[%c5, %124, %c0_40] : memref<17x8x128xf32, #tpu.memory_space<vmem>>, vector<1x8x128xf32>
    %126 = vector.shape_cast %125 : vector<1x8x128xf32> to vector<8x128xf32>
    %c6 = arith.constant 6 : index
    %127 = arith.index_cast %6 : i32 to index
    %c0_41 = arith.constant 0 : index
    %128 = vector.load %arg2[%c6, %127, %c0_41] : memref<17x8x128xf32, #tpu.memory_space<vmem>>, vector<1x8x128xf32>
    %129 = vector.shape_cast %128 : vector<1x8x128xf32> to vector<8x128xf32>
    %c7 = arith.constant 7 : index
    %130 = arith.index_cast %6 : i32 to index
    %c0_42 = arith.constant 0 : index
    %131 = vector.load %arg2[%c7, %130, %c0_42] : memref<17x8x128xf32, #tpu.memory_space<vmem>>, vector<1x8x128xf32>
    %132 = vector.shape_cast %131 : vector<1x8x128xf32> to vector<8x128xf32>
    %c8 = arith.constant 8 : index
    %133 = arith.index_cast %6 : i32 to index
    %c0_43 = arith.constant 0 : index
    %134 = vector.load %arg2[%c8, %133, %c0_43] : memref<17x8x128xf32, #tpu.memory_space<vmem>>, vector<1x8x128xf32>
    %135 = vector.shape_cast %134 : vector<1x8x128xf32> to vector<8x128xf32>
    %c9 = arith.constant 9 : index
    %136 = arith.index_cast %6 : i32 to index
    %c0_44 = arith.constant 0 : index
    %137 = vector.load %arg2[%c9, %136, %c0_44] : memref<17x8x128xf32, #tpu.memory_space<vmem>>, vector<1x8x128xf32>
    %138 = vector.shape_cast %137 : vector<1x8x128xf32> to vector<8x128xf32>
    %c5_45 = arith.constant 5 : index
    %139 = arith.index_cast %6 : i32 to index
    %c0_46 = arith.constant 0 : index
    %140 = vector.load %arg3[%c5_45, %139, %c0_46] : memref<17x8x128xf32, #tpu.memory_space<vmem>>, vector<1x8x128xf32>
    %141 = vector.shape_cast %140 : vector<1x8x128xf32> to vector<8x128xf32>
    %c6_47 = arith.constant 6 : index
    %142 = arith.index_cast %6 : i32 to index
    %c0_48 = arith.constant 0 : index
    %143 = vector.load %arg3[%c6_47, %142, %c0_48] : memref<17x8x128xf32, #tpu.memory_space<vmem>>, vector<1x8x128xf32>
    %144 = vector.shape_cast %143 : vector<1x8x128xf32> to vector<8x128xf32>
    %c7_49 = arith.constant 7 : index
    %145 = arith.index_cast %6 : i32 to index
    %c0_50 = arith.constant 0 : index
    %146 = vector.load %arg3[%c7_49, %145, %c0_50] : memref<17x8x128xf32, #tpu.memory_space<vmem>>, vector<1x8x128xf32>
    %147 = vector.shape_cast %146 : vector<1x8x128xf32> to vector<8x128xf32>
    %c8_51 = arith.constant 8 : index
    %148 = arith.index_cast %6 : i32 to index
    %c0_52 = arith.constant 0 : index
    %149 = vector.load %arg3[%c8_51, %148, %c0_52] : memref<17x8x128xf32, #tpu.memory_space<vmem>>, vector<1x8x128xf32>
    %150 = vector.shape_cast %149 : vector<1x8x128xf32> to vector<8x128xf32>
    %c9_53 = arith.constant 9 : index
    %151 = arith.index_cast %6 : i32 to index
    %c0_54 = arith.constant 0 : index
    %152 = vector.load %arg3[%c9_53, %151, %c0_54] : memref<17x8x128xf32, #tpu.memory_space<vmem>>, vector<1x8x128xf32>
    %153 = vector.shape_cast %152 : vector<1x8x128xf32> to vector<8x128xf32>
    %154 = arith.subf %138, %153 : vector<8x128xf32>
    %155 = arith.mulf %154, %154 : vector<8x128xf32>
    %156 = arith.addf %57, %155 : vector<8x128xf32>
    %cst_55 = arith.constant 0.142857149 : f32
    %157 = vector.broadcast %cst_55 : f32 to vector<8x128xf32>
    %158 = arith.mulf %126, %157 : vector<8x128xf32>
    %cst_56 = arith.constant 0.142857149 : f32
    %159 = vector.broadcast %cst_56 : f32 to vector<8x128xf32>
    %160 = arith.mulf %129, %159 : vector<8x128xf32>
    %cst_57 = arith.constant 5.000000e-01 : f32
    %161 = vector.broadcast %cst_57 : f32 to vector<8x128xf32>
    %162 = arith.mulf %161, %132 : vector<8x128xf32>
    %cst_58 = arith.constant 5.000000e-01 : f32
    %163 = vector.broadcast %cst_58 : f32 to vector<8x128xf32>
    %164 = arith.mulf %163, %135 : vector<8x128xf32>
    %165 = arith.subf %158, %162 : vector<8x128xf32>
    %166 = arith.addf %158, %162 : vector<8x128xf32>
    %167 = arith.subf %160, %164 : vector<8x128xf32>
    %168 = arith.addf %160, %164 : vector<8x128xf32>
    %169 = arith.minimumf %166, %31 : vector<8x128xf32>
    %170 = arith.maximumf %165, %30 : vector<8x128xf32>
    %171 = arith.subf %169, %170 : vector<8x128xf32>
    %cst_59 = arith.constant 0.000000e+00 : f32
    %172 = vector.broadcast %cst_59 : f32 to vector<8x128xf32>
    %173 = arith.maximumf %171, %172 : vector<8x128xf32>
    %174 = arith.minimumf %168, %33 : vector<8x128xf32>
    %175 = arith.maximumf %167, %32 : vector<8x128xf32>
    %176 = arith.subf %174, %175 : vector<8x128xf32>
    %cst_60 = arith.constant 0.000000e+00 : f32
    %177 = vector.broadcast %cst_60 : f32 to vector<8x128xf32>
    %178 = arith.maximumf %176, %177 : vector<8x128xf32>
    %179 = arith.mulf %173, %178 : vector<8x128xf32>
    %180 = arith.subf %166, %165 : vector<8x128xf32>
    %181 = arith.subf %168, %167 : vector<8x128xf32>
    %182 = arith.mulf %180, %181 : vector<8x128xf32>
    %183 = arith.addf %182, %36 : vector<8x128xf32>
    %184 = arith.subf %183, %179 : vector<8x128xf32>
    %cst_61 = arith.constant 9.99999996E-13 : f32
    %185 = vector.broadcast %cst_61 : f32 to vector<8x128xf32>
    %186 = arith.maximumf %184, %185 : vector<8x128xf32>
    %187 = arith.divf %179, %186 : vector<8x128xf32>
    %188 = arith.subf %126, %141 : vector<8x128xf32>
    %189 = arith.subf %129, %144 : vector<8x128xf32>
    %cst_62 = arith.constant 0.000000e+00 : f32
    %190 = vector.broadcast %cst_62 : f32 to vector<8x128xf32>
    %191 = arith.maximumf %132, %190 : vector<8x128xf32>
    %cst_63 = arith.constant 0.000000e+00 : f32
    %192 = vector.broadcast %cst_63 : f32 to vector<8x128xf32>
    %193 = arith.maximumf %147, %192 : vector<8x128xf32>
    %cst_64 = arith.constant 0.000000e+00 : f32
    %194 = vector.broadcast %cst_64 : f32 to vector<8x128xf32>
    %195 = arith.maximumf %135, %194 : vector<8x128xf32>
    %cst_65 = arith.constant 0.000000e+00 : f32
    %196 = vector.broadcast %cst_65 : f32 to vector<8x128xf32>
    %197 = arith.maximumf %150, %196 : vector<8x128xf32>
    %198 = arith.addf %191, %193 : vector<8x128xf32>
    %199 = arith.mulf %191, %193 : vector<8x128xf32>
    %200 = math.sqrt %199 : vector<8x128xf32>
    %cst_66 = arith.constant 2.000000e+00 : f32
    %201 = vector.broadcast %cst_66 : f32 to vector<8x128xf32>
    %202 = arith.mulf %201, %200 : vector<8x128xf32>
    %203 = arith.subf %198, %202 : vector<8x128xf32>
    %204 = arith.addf %203, %195 : vector<8x128xf32>
    %205 = arith.addf %204, %197 : vector<8x128xf32>
    %206 = arith.mulf %195, %197 : vector<8x128xf32>
    %207 = math.sqrt %206 : vector<8x128xf32>
    %cst_67 = arith.constant 2.000000e+00 : f32
    %208 = vector.broadcast %cst_67 : f32 to vector<8x128xf32>
    %209 = arith.mulf %208, %207 : vector<8x128xf32>
    %210 = arith.subf %205, %209 : vector<8x128xf32>
    %211 = arith.subf %138, %187 : vector<8x128xf32>
    %212 = arith.mulf %188, %188 : vector<8x128xf32>
    %213 = arith.mulf %189, %189 : vector<8x128xf32>
    %214 = arith.addf %212, %213 : vector<8x128xf32>
    %215 = arith.addf %214, %210 : vector<8x128xf32>
    %cst_68 = arith.constant 5.000000e+00 : f32
    %216 = vector.broadcast %cst_68 : f32 to vector<8x128xf32>
    %217 = arith.mulf %216, %215 : vector<8x128xf32>
    %218 = arith.mulf %211, %211 : vector<8x128xf32>
    %219 = arith.addf %217, %218 : vector<8x128xf32>
    %220 = arith.cmpf ogt, %187, %122 : vector<8x128xf32>
    %221 = arith.select %220, %187, %122 : vector<8x128xi1>, vector<8x128xf32>
    %222 = arith.select %220, %219, %123 : vector<8x128xi1>, vector<8x128xf32>
    %c10 = arith.constant 10 : index
    %223 = arith.index_cast %6 : i32 to index
    %c0_69 = arith.constant 0 : index
    %224 = vector.load %arg2[%c10, %223, %c0_69] : memref<17x8x128xf32, #tpu.memory_space<vmem>>, vector<1x8x128xf32>
    %225 = vector.shape_cast %224 : vector<1x8x128xf32> to vector<8x128xf32>
    %c11 = arith.constant 11 : index
    %226 = arith.index_cast %6 : i32 to index
    %c0_70 = arith.constant 0 : index
    %227 = vector.load %arg2[%c11, %226, %c0_70] : memref<17x8x128xf32, #tpu.memory_space<vmem>>, vector<1x8x128xf32>
    %228 = vector.shape_cast %227 : vector<1x8x128xf32> to vector<8x128xf32>
    %c12 = arith.constant 12 : index
    %229 = arith.index_cast %6 : i32 to index
    %c0_71 = arith.constant 0 : index
    %230 = vector.load %arg2[%c12, %229, %c0_71] : memref<17x8x128xf32, #tpu.memory_space<vmem>>, vector<1x8x128xf32>
    %231 = vector.shape_cast %230 : vector<1x8x128xf32> to vector<8x128xf32>
    %c13 = arith.constant 13 : index
    %232 = arith.index_cast %6 : i32 to index
    %c0_72 = arith.constant 0 : index
    %233 = vector.load %arg2[%c13, %232, %c0_72] : memref<17x8x128xf32, #tpu.memory_space<vmem>>, vector<1x8x128xf32>
    %234 = vector.shape_cast %233 : vector<1x8x128xf32> to vector<8x128xf32>
    %c14 = arith.constant 14 : index
    %235 = arith.index_cast %6 : i32 to index
    %c0_73 = arith.constant 0 : index
    %236 = vector.load %arg2[%c14, %235, %c0_73] : memref<17x8x128xf32, #tpu.memory_space<vmem>>, vector<1x8x128xf32>
    %237 = vector.shape_cast %236 : vector<1x8x128xf32> to vector<8x128xf32>
    %c10_74 = arith.constant 10 : index
    %238 = arith.index_cast %6 : i32 to index
    %c0_75 = arith.constant 0 : index
    %239 = vector.load %arg3[%c10_74, %238, %c0_75] : memref<17x8x128xf32, #tpu.memory_space<vmem>>, vector<1x8x128xf32>
    %240 = vector.shape_cast %239 : vector<1x8x128xf32> to vector<8x128xf32>
    %c11_76 = arith.constant 11 : index
    %241 = arith.index_cast %6 : i32 to index
    %c0_77 = arith.constant 0 : index
    %242 = vector.load %arg3[%c11_76, %241, %c0_77] : memref<17x8x128xf32, #tpu.memory_space<vmem>>, vector<1x8x128xf32>
    %243 = vector.shape_cast %242 : vector<1x8x128xf32> to vector<8x128xf32>
    %c12_78 = arith.constant 12 : index
    %244 = arith.index_cast %6 : i32 to index
    %c0_79 = arith.constant 0 : index
    %245 = vector.load %arg3[%c12_78, %244, %c0_79] : memref<17x8x128xf32, #tpu.memory_space<vmem>>, vector<1x8x128xf32>
    %246 = vector.shape_cast %245 : vector<1x8x128xf32> to vector<8x128xf32>
    %c13_80 = arith.constant 13 : index
    %247 = arith.index_cast %6 : i32 to index
    %c0_81 = arith.constant 0 : index
    %248 = vector.load %arg3[%c13_80, %247, %c0_81] : memref<17x8x128xf32, #tpu.memory_space<vmem>>, vector<1x8x128xf32>
    %249 = vector.shape_cast %248 : vector<1x8x128xf32> to vector<8x128xf32>
    %c14_82 = arith.constant 14 : index
    %250 = arith.index_cast %6 : i32 to index
    %c0_83 = arith.constant 0 : index
    %251 = vector.load %arg3[%c14_82, %250, %c0_83] : memref<17x8x128xf32, #tpu.memory_space<vmem>>, vector<1x8x128xf32>
    %252 = vector.shape_cast %251 : vector<1x8x128xf32> to vector<8x128xf32>
    %253 = arith.subf %237, %252 : vector<8x128xf32>
    %254 = arith.mulf %253, %253 : vector<8x128xf32>
    %255 = arith.addf %156, %254 : vector<8x128xf32>
    %cst_84 = arith.constant 0.142857149 : f32
    %256 = vector.broadcast %cst_84 : f32 to vector<8x128xf32>
    %257 = arith.mulf %225, %256 : vector<8x128xf32>
    %cst_85 = arith.constant 0.142857149 : f32
    %258 = vector.broadcast %cst_85 : f32 to vector<8x128xf32>
    %259 = arith.mulf %228, %258 : vector<8x128xf32>
    %cst_86 = arith.constant 5.000000e-01 : f32
    %260 = vector.broadcast %cst_86 : f32 to vector<8x128xf32>
    %261 = arith.mulf %260, %231 : vector<8x128xf32>
    %cst_87 = arith.constant 5.000000e-01 : f32
    %262 = vector.broadcast %cst_87 : f32 to vector<8x128xf32>
    %263 = arith.mulf %262, %234 : vector<8x128xf32>
    %264 = arith.subf %257, %261 : vector<8x128xf32>
    %265 = arith.addf %257, %261 : vector<8x128xf32>
    %266 = arith.subf %259, %263 : vector<8x128xf32>
    %267 = arith.addf %259, %263 : vector<8x128xf32>
    %268 = arith.minimumf %265, %31 : vector<8x128xf32>
    %269 = arith.maximumf %264, %30 : vector<8x128xf32>
    %270 = arith.subf %268, %269 : vector<8x128xf32>
    %cst_88 = arith.constant 0.000000e+00 : f32
    %271 = vector.broadcast %cst_88 : f32 to vector<8x128xf32>
    %272 = arith.maximumf %270, %271 : vector<8x128xf32>
    %273 = arith.minimumf %267, %33 : vector<8x128xf32>
    %274 = arith.maximumf %266, %32 : vector<8x128xf32>
    %275 = arith.subf %273, %274 : vector<8x128xf32>
    %cst_89 = arith.constant 0.000000e+00 : f32
    %276 = vector.broadcast %cst_89 : f32 to vector<8x128xf32>
    %277 = arith.maximumf %275, %276 : vector<8x128xf32>
    %278 = arith.mulf %272, %277 : vector<8x128xf32>
    %279 = arith.subf %265, %264 : vector<8x128xf32>
    %280 = arith.subf %267, %266 : vector<8x128xf32>
    %281 = arith.mulf %279, %280 : vector<8x128xf32>
    %282 = arith.addf %281, %36 : vector<8x128xf32>
    %283 = arith.subf %282, %278 : vector<8x128xf32>
    %cst_90 = arith.constant 9.99999996E-13 : f32
    %284 = vector.broadcast %cst_90 : f32 to vector<8x128xf32>
    %285 = arith.maximumf %283, %284 : vector<8x128xf32>
    %286 = arith.divf %278, %285 : vector<8x128xf32>
    %287 = arith.subf %225, %240 : vector<8x128xf32>
    %288 = arith.subf %228, %243 : vector<8x128xf32>
    %cst_91 = arith.constant 0.000000e+00 : f32
    %289 = vector.broadcast %cst_91 : f32 to vector<8x128xf32>
    %290 = arith.maximumf %231, %289 : vector<8x128xf32>
    %cst_92 = arith.constant 0.000000e+00 : f32
    %291 = vector.broadcast %cst_92 : f32 to vector<8x128xf32>
    %292 = arith.maximumf %246, %291 : vector<8x128xf32>
    %cst_93 = arith.constant 0.000000e+00 : f32
    %293 = vector.broadcast %cst_93 : f32 to vector<8x128xf32>
    %294 = arith.maximumf %234, %293 : vector<8x128xf32>
    %cst_94 = arith.constant 0.000000e+00 : f32
    %295 = vector.broadcast %cst_94 : f32 to vector<8x128xf32>
    %296 = arith.maximumf %249, %295 : vector<8x128xf32>
    %297 = arith.addf %290, %292 : vector<8x128xf32>
    %298 = arith.mulf %290, %292 : vector<8x128xf32>
    %299 = math.sqrt %298 : vector<8x128xf32>
    %cst_95 = arith.constant 2.000000e+00 : f32
    %300 = vector.broadcast %cst_95 : f32 to vector<8x128xf32>
    %301 = arith.mulf %300, %299 : vector<8x128xf32>
    %302 = arith.subf %297, %301 : vector<8x128xf32>
    %303 = arith.addf %302, %294 : vector<8x128xf32>
    %304 = arith.addf %303, %296 : vector<8x128xf32>
    %305 = arith.mulf %294, %296 : vector<8x128xf32>
    %306 = math.sqrt %305 : vector<8x128xf32>
    %cst_96 = arith.constant 2.000000e+00 : f32
    %307 = vector.broadcast %cst_96 : f32 to vector<8x128xf32>
    %308 = arith.mulf %307, %306 : vector<8x128xf32>
    %309 = arith.subf %304, %308 : vector<8x128xf32>
    %310 = arith.subf %237, %286 : vector<8x128xf32>
    %311 = arith.mulf %287, %287 : vector<8x128xf32>
    %312 = arith.mulf %288, %288 : vector<8x128xf32>
    %313 = arith.addf %311, %312 : vector<8x128xf32>
    %314 = arith.addf %313, %309 : vector<8x128xf32>
    %cst_97 = arith.constant 5.000000e+00 : f32
    %315 = vector.broadcast %cst_97 : f32 to vector<8x128xf32>
    %316 = arith.mulf %315, %314 : vector<8x128xf32>
    %317 = arith.mulf %310, %310 : vector<8x128xf32>
    %318 = arith.addf %316, %317 : vector<8x128xf32>
    %319 = arith.cmpf ogt, %286, %221 : vector<8x128xf32>
    %320 = arith.select %319, %318, %222 : vector<8x128xi1>, vector<8x128xf32>
    %cst_98 = arith.constant 1.000000e+00 : f32
    %321 = vector.broadcast %cst_98 : f32 to vector<8x128xf32>
    %322 = arith.cmpf oeq, %21, %321 : vector<8x128xf32>
    %323 = arith.extui %322 : vector<8x128xi1> to vector<8x128xi32>
    %324 = arith.sitofp %323 : vector<8x128xi32> to vector<8x128xf32>
    %cst_99 = arith.constant 0.000000e+00 : f32
    %325 = vector.broadcast %cst_99 : f32 to vector<8x128xf32>
    %326 = arith.cmpf oeq, %21, %325 : vector<8x128xf32>
    %327 = arith.extui %326 : vector<8x128xi1> to vector<8x128xi32>
    %328 = arith.sitofp %327 : vector<8x128xi32> to vector<8x128xf32>
    %cst_100 = arith.constant 0.000000e+00 : f32
    %329 = vector.broadcast %cst_100 : f32 to vector<8x128xf32>
    %c15 = arith.constant 15 : index
    %330 = arith.index_cast %6 : i32 to index
    %c0_101 = arith.constant 0 : index
    %331 = vector.load %arg2[%c15, %330, %c0_101] : memref<17x8x128xf32, #tpu.memory_space<vmem>>, vector<1x8x128xf32>
    %332 = vector.shape_cast %331 : vector<1x8x128xf32> to vector<8x128xf32>
    %c15_102 = arith.constant 15 : index
    %333 = arith.index_cast %6 : i32 to index
    %c0_103 = arith.constant 0 : index
    %334 = vector.load %arg3[%c15_102, %333, %c0_103] : memref<17x8x128xf32, #tpu.memory_space<vmem>>, vector<1x8x128xf32>
    %335 = vector.shape_cast %334 : vector<1x8x128xf32> to vector<8x128xf32>
    %336 = arith.subf %332, %335 : vector<8x128xf32>
    %337 = arith.mulf %336, %336 : vector<8x128xf32>
    %338 = arith.addf %329, %337 : vector<8x128xf32>
    %c16 = arith.constant 16 : index
    %339 = arith.index_cast %6 : i32 to index
    %c0_104 = arith.constant 0 : index
    %340 = vector.load %arg2[%c16, %339, %c0_104] : memref<17x8x128xf32, #tpu.memory_space<vmem>>, vector<1x8x128xf32>
    %341 = vector.shape_cast %340 : vector<1x8x128xf32> to vector<8x128xf32>
    %c16_105 = arith.constant 16 : index
    %342 = arith.index_cast %6 : i32 to index
    %c0_106 = arith.constant 0 : index
    %343 = vector.load %arg3[%c16_105, %342, %c0_106] : memref<17x8x128xf32, #tpu.memory_space<vmem>>, vector<1x8x128xf32>
    %344 = vector.shape_cast %343 : vector<1x8x128xf32> to vector<8x128xf32>
    %345 = arith.subf %341, %344 : vector<8x128xf32>
    %346 = arith.mulf %345, %345 : vector<8x128xf32>
    %347 = arith.addf %338, %346 : vector<8x128xf32>
    %348 = arith.addf %320, %347 : vector<8x128xf32>
    %349 = arith.mulf %324, %348 : vector<8x128xf32>
    %350 = arith.mulf %328, %255 : vector<8x128xf32>
    %cst_107 = arith.constant 5.000000e-01 : f32
    %351 = vector.broadcast %cst_107 : f32 to vector<8x128xf32>
    %352 = arith.mulf %351, %350 : vector<8x128xf32>
    %353 = arith.addf %349, %352 : vector<8x128xf32>
    %354 = arith.addf %4, %353 : vector<8x128xf32>
    %c1_i32 = arith.constant 1 : i32
    %355 = arith.addf %3, %354 : vector<8x128xf32>
    %c0_108 = arith.constant 0 : index
    %c0_109 = arith.constant 0 : index
    %356 = vector.load %arg5[%c0_108, %c0_109] : memref<8x128xf32, #tpu.memory_space<vmem>>, vector<8x128xf32>
    tpu.vector_store %arg5[%c0_108, %c0_109], %355 {strides = array<i32>} : memref<8x128xf32, #tpu.memory_space<vmem>>, vector<8x128xf32>,
    %c0_i32_110 = arith.constant 0 : i32
    %357 = arith.cmpi eq, %arg1, %c0_i32_110 : i32
    %358 = arith.extui %357 : i1 to i32
    %c0_i32_111 = arith.constant 0 : i32
    %359 = arith.cmpi ne, %358, %c0_i32_111 : i32
    scf.if %359 {
      %c0_112 = arith.constant 0 : index
      %c0_113 = arith.constant 0 : index
      %360 = vector.load %arg5[%c0_112, %c0_113] : memref<8x128xf32, #tpu.memory_space<vmem>>, vector<8x128xf32>
      %c0_114 = arith.constant 0 : index
      %c0_115 = arith.constant 0 : index
      %c0_116 = arith.constant 0 : index
      %361 = vector.load %arg4[%c0_114, %c0_115, %c0_116] : memref<1x8x128xf32, #tpu.memory_space<vmem>>, vector<1x8x128xf32>
      %362 = vector.shape_cast %361 : vector<1x8x128xf32> to vector<8x128xf32>
      %363 = vector.shape_cast %360 : vector<8x128xf32> to vector<1x8x128xf32>
      tpu.vector_store %arg4[%c0_114, %c0_115, %c0_116], %363 {strides = array<i32>} : memref<1x8x128xf32, #tpu.memory_space<vmem>>, vector<1x8x128xf32>,
    } else {
    }
    return
  }
  func.func @transform_0(%arg0: i32, %arg1: i32) -> (i32, i32, i32) {
    %c1_i32 = arith.constant 1 : i32
    %0 = arith.muli %arg0, %c1_i32 : i32
    %1 = arith.addi %0, %arg1 : i32
    %c0_i32 = arith.constant 0 : i32
    %c0_i32_0 = arith.constant 0 : i32
    %c0_i32_1 = arith.constant 0 : i32
    return %c0_i32, %1, %c0_i32_0 : i32, i32, i32
  }
  func.func @transform_1(%arg0: i32, %arg1: i32) -> (i32, i32, i32) {
    %c1_i32 = arith.constant 1 : i32
    %0 = arith.muli %arg0, %c1_i32 : i32
    %1 = arith.addi %0, %arg1 : i32
    %c0_i32 = arith.constant 0 : i32
    %c0_i32_0 = arith.constant 0 : i32
    %c0_i32_1 = arith.constant 0 : i32
    return %c0_i32, %1, %c0_i32_0 : i32, i32, i32
  }
  func.func @transform_2(%arg0: i32, %arg1: i32) -> (i32, i32, i32) {
    %c0_i32 = arith.constant 0 : i32
    %c0_i32_0 = arith.constant 0 : i32
    %c0_i32_1 = arith.constant 0 : i32
    return %arg0, %c0_i32, %c0_i32_0 : i32, i32, i32
  }
}

</mosaic_0001>

<bundles_post_ra>
// kernel: detection_loss.1
= control target key start
LH: loop header
LB: loop body
LE: loop exit
PB: predicated region body
PF: predicated region fallthrough
CT: control target
= control target key end

     0   :  { %s816_s0 = inlined_call_operand.vmem [shape: f32[17,8,128], index: 0, kind: input, shape index: {}]   ;;  %s817_s1 = inlined_call_operand.vmem [shape: f32[17,8,128], index: 1, kind: input, shape index: {}]   ;;  %s818_s2 = inlined_call_operand.vmem [shape: f32[1,8,128], index: 2, kind: output, shape index: {}]  }
   0x1   :  { %v492_v0 = vld [vmem:[%s817_s1] sm:$0xff]  ;;  %v497_v1 = vld [vmem:[%s817_s1 + $0x10] sm:$0xff]  ;;  %v502_v2 = vld [vmem:[%s817_s1 + $0x8] sm:$0xff] }
   0x2   :  { %v507_v3 = vld [vmem:[%s817_s1 + $0x18] sm:$0xff]  ;;  %v512_v4 = vld [vmem:[%s816_s0] sm:$0xff]  ;;  %v517_v5 = vld [vmem:[%s816_s0 + $0x8] sm:$0xff]  ;;  %v64_v7 = vmul.f32 0.14285715, %v492_v0  ;;  %v66_v8 = vmul.f32 0.5, %v497_v1 }
   0x3   :  { %v522_v6 = vld [vmem:[%s816_s0 + $0x10] sm:$0xff]  ;;  %v529_v9 = vld [vmem:[%s816_s0 + $0x18] sm:$0xff]  ;;  %v65_v10 = vmul.f32 0.14285715, %v502_v2  ;;  %v67_v11 = vmul.f32 0.5, %v507_v3  ;;  %v115_v13 = vmax.f32 %v497_v1, 0.0 }
   0x4   :  { %v87_v12 = vmul.f32 0.14285715, %v512_v4  ;;  %v88_v14 = vmul.f32 0.14285715, %v517_v5  ;;  %v89_v15 = vmul.f32 0.5, %v522_v6  ;;  %v90_v16 = vmul.f32 0.5, %v529_v9 }
   0x5   :  { %v114_v17 = vmax.f32 %v522_v6, 0.0  ;;  %v539_v18 = vsub.f32 %v64_v7, %v66_v8  ;;  %v541_v19 = vadd.f32 %v66_v8, %v64_v7  ;;  %v543_v20 = vsub.f32 %v65_v10, %v67_v11  ;;  %v557_v27 = vld [vmem:[%s816_s0 + $0x28] sm:$0xff]  ;;  %v562_v28 = vld [vmem:[%s816_s0 + $0x30] sm:$0xff]  ;;  %v567_v29 = vld [vmem:[%s816_s0 + $0x38] sm:$0xff] }
   0x6   :  { %v545_v21 = vadd.f32 %v67_v11, %v65_v10  ;;  %v91_v23 = vsub.f32 %v87_v12, %v89_v15  ;;  %v92_v24 = vadd.f32 %v89_v15, %v87_v12  ;;  %v93_v25 = vsub.f32 %v88_v14, %v90_v16  ;;  %v576_v34 = vld [vmem:[%s816_s0 + $0x40] sm:$0xff]  ;;  %v590_v44 = vld [vmem:[%s817_s1 + $0x38] sm:$0xff] }
   0x7   :  { %v551_v22 = vmul.f32 %v115_v13, %v114_v17  ;;  %v94_v26 = vadd.f32 %v90_v16, %v88_v14  ;;  %v72_v35 = vsub.f32 %v541_v19, %v539_v18  ;;  %v116_v36 = vmax.f32 %v529_v9, 0.0  ;;  %v602_v53 = vld [vmem:[%s817_s1 + $0x40] sm:$0xff] }
   0x8   :  { %v95_v30 = vmin.f32 %v92_v24, %v541_v19  ;;  %v96_v31 = vmax.f32 %v91_v23, %v539_v18  ;;  %v100_v33 = vmax.f32 %v93_v25, %v543_v20  ;;  %v117_v37 = vmax.f32 %v507_v3, 0.0 }
   0x9   :  { %455 = vrsqrt.f32 %v551_v22  ;;  %v99_v32 = vmin.f32 %v94_v26, %v545_v21  ;;  %v180_v38 = vmul.f32 0.14285715, %v557_v27  ;;  %v181_v39 = vmul.f32 0.14285715, %v562_v28 }
   0xa   :  { %v182_v40 = vmul.f32 0.5, %v567_v29  ;;  %v73_v41 = vsub.f32 %v545_v21, %v543_v20  ;;  %v104_v42 = vsub.f32 %v92_v24, %v91_v23  ;;  %v105_v43 = vsub.f32 %v94_v26, %v93_v25 }
   0xb   :  { %v183_v45 = vmul.f32 0.5, %v576_v34  ;;  %v97_v46 = vsub.f32 %v95_v30, %v96_v31  ;;  %v101_v47 = vsub.f32 %v99_v32, %v100_v33  ;;  %v597_v52 = vmul.f32 %v117_v37, %v116_v36  ;;  %v636_v32 = vld [vmem:[%s816_s0 + $0x50] sm:$0xff] }
   0xc   :  { %v184_v48 = vsub.f32 %v180_v38, %v182_v40  ;;  %v185_v49 = vadd.f32 %v182_v40, %v180_v38  ;;  %v207_v54 = vmax.f32 %v567_v29, 0.0  ;;  %v208_v55 = vmax.f32 %v590_v44, 0.0  ;;  %v651_v38 = vld [vmem:[%s816_s0 + $0x68] sm:$0xff] }
   0xd   :  { %v186_v50 = vsub.f32 %v181_v39, %v183_v45  ;;  %v187_v51 = vadd.f32 %v183_v45, %v181_v39  ;;  %v610_v61 = vmul.f32 %v73_v41, %v72_v35  ;;  %v98_v62 = vmax.f32 %v97_v46, 0.0  ;;  %v641_v35 = vld [vmem:[%s816_s0 + $0x58] sm:$0xff] }
   0xe   :  { %v188_v57 = vmin.f32 %v185_v49, %v541_v19  ;;  %v189_v58 = vmax.f32 %v184_v48, %v539_v18  ;;  %v102_v63 = vmax.f32 %v101_v47, 0.0  ;;  %v106_v7 = vmul.f32 %v105_v43, %v104_v42 }
   0xf   :  { %v192_v59 = vmin.f32 %v187_v51, %v545_v21  ;;  %v193_v60 = vmax.f32 %v186_v50, %v543_v20  ;;  %v209_v10 = vmax.f32 %v576_v34, 0.0  ;;  %v210_v11 = vmax.f32 %v602_v53, 0.0  ;;  %v443_v34 = vld [vmem:[%s817_s1 + $0x50] sm:$0xff] }
  0x10   :  { %vm122_vm0 = vcmp.eq.f32.partialorder %v551_v22, inf  ;;  %v197_v12 = vsub.f32 %v185_v49, %v184_v48  ;;  %v198_v14 = vsub.f32 %v187_v51, %v186_v50  ;;  %v212_v15 = vmul.f32 %v208_v55, %v207_v54 }
  0x11   :  { %457 = vrsqrt.f32 %v597_v52  ;;  %v190_v16 = vsub.f32 %v188_v57, %v189_v58  ;;  %v194_v23 = vsub.f32 %v192_v59, %v193_v60  ;;  %v621_v24 = vmul.f32 %v102_v63, %v98_v62 }
  0x12   :  { %v107_v25 = vadd.f32 %v106_v7, %v610_v61  ;;  %v125_v26 = vand.u32 2147483648, %v551_v22  ;;  %459 = vrsqrt.f32 %v212_v15  ;;  %vm124_vm1 = vcmp.eq.f32.partialorder %v551_v22, 0.0 }
  0x13   :  { %v456_v56 = vpop.eup %455  ;;  %v631_v31 = vmul.f32 %v210_v11, %v209_v10  ;;  %v199_v33 = vmul.f32 %v198_v14, %v197_v12  ;;  %v191_v39 = vmax.f32 %v190_v16, 0.0  ;;  %v195_v40 = vmax.f32 %v194_v23, 0.0 }
  0x14   :  { %v121_v8 = vmul.f32 %v456_v56, %v551_v22  ;;  %v108_v41 = vsub.f32 %v107_v25, %v621_v24  ;;  %v273_v43 = vmul.f32 0.14285715, %v636_v32  ;;  %v274_v45 = vmul.f32 0.14285715, %v641_v35 }
  0x15   :  { %461 = vrsqrt.f32 %v631_v31  ;;  %v276_v47 = vmul.f32 0.5, %v651_v38  ;;  %v200_v48 = vadd.f32 %v199_v33, %v610_v61  ;;  %v660_v49 = vmul.f32 %v195_v40, %v191_v39 }
  0x16   :  { %v123_v30 = vsel %vm122_vm0, %v551_v22, %v121_v8  ;;  %v646_v22 = vld [vmem:[%s816_s0 + $0x60] sm:$0xff]  ;;  %v109_v57 = vmax.f32 %v108_v41, 1e-12  ;;  %v118_v58 = vadd.f32 %v115_v13, %v114_v17  ;;  %vm215_vm2 = vcmp.eq.f32.partialorder %v212_v15, inf }
  0x17   :  { %v126_v42 = vsel %vm124_vm1, %v125_v26, %v123_v30  ;;  %v275_v46 = vmul.f32 0.5, %v646_v22  ;;  %v279_v56 = vsub.f32 %v274_v45, %v276_v47  ;;  %v280_v60 = vadd.f32 %v276_v47, %v274_v45  ;;  %v678_v26 = vld [vmem:[%s817_s1 + $0x60] sm:$0xff] }
  0x18   :  { %v127_v59 = vmul.f32 2.0, %v126_v42  ;;  %vm217_vm3 = vcmp.eq.f32.partialorder %v212_v15, 0.0  ;;  %v218_v16 = vand.u32 2147483648, %v212_v15  ;;  %v201_v6 = vsub.f32 %v200_v48, %v660_v49 }
  0x19   :  { %v277_v50 = vsub.f32 %v273_v43, %v275_v46  ;;  %v278_v51 = vadd.f32 %v275_v46, %v273_v43  ;;  %v286_v8 = vmax.f32 %v279_v56, %v543_v20  ;;  %v285_v23 = vmin.f32 %v280_v60, %v545_v21 }
  0x1a   :  { %v291_v17 = vsub.f32 %v280_v60, %v279_v56  ;;  %v112_v25 = vsub.f32 %v512_v4, %v492_v0  ;;  %vm134_vm4 = vcmp.eq.f32.partialorder %v597_v52, inf  ;;  %463 = vrcp.f32 %v109_v57  ;;  %v685_v0 = vld [vmem:[%s817_s1 + $0x68] sm:$0xff]  ;;  %v732_v60 = vld [vmem:[%s817_s1 + $0x20] sm:$0xff] }
  0x1b   :  { %v458_v62 = vpop.eup %457  ;;  %v281_v63 = vmin.f32 %v278_v51, %v541_v19  ;;  %v282_v7 = vmax.f32 %v277_v50, %v539_v18  ;;  %v290_v12 = vsub.f32 %v278_v51, %v277_v50  ;;  %v287_v18 = vsub.f32 %v285_v23, %v286_v8  ;;  %v433_v56 = vld [vmem:[%s817_s1 + $0x28] sm:$0xff] }
  0x1c   :  { %v460_v14 = vpop.eup %459  ;;  %v133_v19 = vmul.f32 %v458_v62, %v597_v52  ;;  %v137_v33 = vand.u32 2147483648, %v597_v52  ;;  %v128_v41 = vsub.f32 %v118_v58, %v127_v59  ;;  %v202_v42 = vmax.f32 %v201_v6, 1e-12  ;;  %v427_v62 = vld [vmem:[%s816_s0 + $0x20] sm:$0xff]  ;;  %v432_v23 = vld [vmem:[%s816_s0 + $0x48] sm:$0xff] }
  0x1d   :  { %v214_v1 = vmul.f32 %v460_v14, %v212_v15  ;;  %v283_v13 = vsub.f32 %v281_v63, %v282_v7  ;;  %v292_v30 = vmul.f32 %v291_v17, %v290_v12  ;;  %v288_v4 = vmax.f32 %v287_v18, 0.0  ;;  %v437_v6 = vld [vmem:[%s817_s1 + $0x48] sm:$0xff] }
  0x1e   :  { %v300_v45 = vmax.f32 %v646_v22, 0.0  ;;  %v211_v46 = vadd.f32 %v208_v55, %v207_v54  ;;  %v301_v48 = vmax.f32 %v678_v26, 0.0  ;;  %v135_v50 = vsel %vm134_vm4, %v597_v52, %v133_v19 }
  0x1f   :  { %v216_v20 = vsel %vm215_vm2, %v212_v15, %v214_v1  ;;  %v284_v21 = vmax.f32 %v283_v13, 0.0  ;;  %v462_v40 = vpop.eup %461  ;;  %v293_v43 = vadd.f32 %v292_v30, %v610_v61  ;;  %vm136_vm5 = vcmp.eq.f32.partialorder %v597_v52, 0.0 }
  0x20   :  { %v219_v39 = vsel %vm217_vm3, %v218_v16, %v216_v20  ;;  %v302_v61 = vmax.f32 %v651_v38, 0.0  ;;  %v303_v51 = vmax.f32 %v685_v0, 0.0  ;;  %v113_v29 = vsub.f32 %v517_v5, %v502_v2  ;;  %v434_v2 = vld [vmem:[%s817_s1 + $0x30] sm:$0xff] }
  0x21   :  { %v220_v15 = vmul.f32 2.0, %v219_v39  ;;  %v693_v47 = vmul.f32 %v288_v4, %v284_v21  ;;  %v226_v44 = vmul.f32 %v462_v40, %v631_v31  ;;  %v710_v55 = vmul.f32 %v301_v48, %v300_v45  ;;  %v442_v40 = vld [vmem:[%s816_s0 + $0x70] sm:$0xff] }
  0x22   :  { %v129_v52 = vadd.f32 %v128_v41, %v116_v36  ;;  %465 = vrcp.f32 %v202_v42  ;;  %vm227_vm6 = vcmp.eq.f32.partialorder %v631_v31, inf  ;;  %v725_v5 = vmul.f32 %v303_v51, %v302_v61  ;;  %v447_v41 = vld [vmem:[%s817_s1 + $0x70] sm:$0xff] }
  0x23   :  { %v294_v54 = vsub.f32 %v293_v43, %v693_v47  ;;  %v138_v57 = vsel %vm136_vm5, %v137_v33, %v135_v50  ;;  %v221_v9 = vsub.f32 %v211_v46, %v220_v15  ;;  %467 = vrsqrt.f32 %v710_v55 }
  0x24   :  { %v142_v58 = vmul.f32 %v112_v25, %v112_v25  ;;  %v230_v59 = vand.u32 2147483648, %v631_v31  ;;  %v205_v63 = vsub.f32 %v557_v27, %v433_v56  ;;  %v206_v7 = vsub.f32 %v562_v28, %v434_v2  ;;  %v464_v27 = vpop.eup %463 }
  0x25   :  { %v295_v36 = vmax.f32 %v294_v54, 1e-12  ;;  %v228_v8 = vsel %vm227_vm6, %v631_v31, %v226_v44  ;;  %vm229_vm7 = vcmp.eq.f32.partialorder %v631_v31, 0.0  ;;  %v130_v12 = vadd.f32 %v129_v52, %v117_v37 }
  0x26   :  { %v139_v14 = vmul.f32 2.0, %v138_v57  ;;  %v143_v16 = vmul.f32 %v113_v29, %v113_v29  ;;  %469 = vrsqrt.f32 %v725_v5  ;;  %v222_v28 = vadd.f32 %v221_v9, %v209_v10  ;;  %v444_v10 = vld [vmem:[%s817_s1 + $0x58] sm:$0xff] }
  0x27   :  { %471 = vrcp.f32 %v295_v36  ;;  %v84_v3 = vsub.f32 %v427_v62, %v732_v60  ;;  %v231_v37 = vsel %vm229_vm7, %v230_v59, %v228_v8  ;;  %v177_v31 = vsub.f32 %v432_v23, %v437_v6  ;;  %v450_v9 = vld [vmem:[%s816_s0 + $0x78] sm:$0xff] }
  0x28   :  { %v235_v1 = vmul.f32 %v205_v63, %v205_v63  ;;  %v236_v13 = vmul.f32 %v206_v7, %v206_v7  ;;  %v754_v17 = vmul.f32 %v464_v27, %v621_v24  ;;  %v140_v25 = vsub.f32 %v130_v12, %v139_v14  ;;  %v451_v63 = vld [vmem:[%s817_s1 + $0x78] sm:$0xff]  ;;  %v452_v7 = vld [vmem:[%s816_s0 + $0x80] sm:$0xff] }
  0x29   :  { %v144_v18 = vadd.f32 %v143_v16, %v142_v58  ;;  %v223_v19 = vadd.f32 %v222_v28, %v210_v11  ;;  %v232_v20 = vmul.f32 2.0, %v231_v37  ;;  %v85_v30 = vmul.f32 %v84_v3, %v84_v3 }
  0x2a   :  { %v178_v39 = vmul.f32 %v177_v31, %v177_v31  ;;  %v237_v24 = vadd.f32 %v236_v13, %v235_v1  ;;  %vm308_vm8 = vcmp.eq.f32.partialorder %v710_v55, inf  ;;  %v311_v4 = vand.u32 2147483648, %v710_v55 }
  0x2b   :  { %v141_v53 = vsub.f32 %v427_v62, %v754_v17  ;;  %v145_v11 = vadd.f32 %v144_v18, %v140_v25  ;;  %vm310_vm9 = vcmp.eq.f32.partialorder %v710_v55, 0.0  ;;  %v233_v46 = vsub.f32 %v223_v19, %v232_v20 }
  0x2c   :  { %v466_v21 = vpop.eup %465  ;;  %v298_v15 = vsub.f32 %v636_v32, %v443_v34  ;;  %v299_v50 = vsub.f32 %v641_v35, %v444_v10  ;;  %v304_v44 = vadd.f32 %v301_v48, %v300_v45  ;;  %vm320_vm10 = vcmp.eq.f32.partialorder %v725_v5, inf }
  0x2d   :  { %v468_v33 = vpop.eup %467  ;;  %v204_v43 = vmul.f32 %v466_v21, %v660_v49  ;;  %v323_v52 = vand.u32 2147483648, %v725_v5  ;;  %v270_v2 = vsub.f32 %v442_v40, %v447_v41  ;;  %vm322_vm11 = vcmp.eq.f32.partialorder %v725_v5, 0.0 }
  0x2e   :  { %v307_v42 = vmul.f32 %v468_v33, %v710_v55  ;;  %v146_v32 = vmul.f32 5.0, %v145_v11  ;;  %v147_v35 = vmul.f32 %v141_v53, %v141_v53  ;;  %vm149_vm12 = vcmp.gt.f32.partialorder %v754_v17, -1.0 }
  0x2f   :  { %v234_v26 = vsub.f32 %v432_v23, %v204_v43  ;;  %v238_v45 = vadd.f32 %v237_v24, %v233_v46  ;;  %v329_v62 = vmul.f32 %v299_v50, %v299_v50  ;;  %v179_v8 = vadd.f32 %v178_v39, %v85_v30 }
  0x30   :  { %v470_v29 = vpop.eup %469  ;;  %v309_v54 = vsel %vm308_vm8, %v710_v55, %v307_v42  ;;  %v328_v55 = vmul.f32 %v298_v15, %v298_v15  ;;  %v271_v12 = vmul.f32 %v270_v2, %v270_v2  ;;  %v148_v14 = vadd.f32 %v147_v35, %v146_v32 }
  0x31   :  { %v472_v56 = vpop.eup %471  ;;  %v312_v49 = vsel %vm310_vm9, %v311_v4, %v309_v54  ;;  %v319_v57 = vmul.f32 %v470_v29, %v725_v5  ;;  %v239_v6 = vmul.f32 5.0, %v238_v45  ;;  %v240_v27 = vmul.f32 %v234_v26, %v234_v26 }
  0x32   :  { %v313_v22 = vmul.f32 2.0, %v312_v49  ;;  %v297_v36 = vmul.f32 %v472_v56, %v693_v47  ;;  %v150_v47 = vsel %vm149_vm12, %v754_v17, -1.0  ;;  %v348_v28 = vsub.f32 %v450_v9, %v451_v63 }
  0x33   :  { %v321_v48 = vsel %vm320_vm10, %v725_v5, %v319_v57  ;;  %v453_v5 = vld [vmem:[%s817_s1 + $0x80] sm:$0xff]  ;;  %v330_v1 = vadd.f32 %v329_v62, %v328_v55  ;;  %vm242_vm13 = vcmp.gt.f32.partialorder %v204_v43, %v150_v47  ;;  %vm340_vm14 = vcmp.eq.f32.partialorder %v732_v60, 0.0 }
  0x34   :  { %v314_v58 = vsub.f32 %v304_v44, %v313_v22  ;;  %v324_v59 = vsel %vm322_vm11, %v323_v52, %v321_v48  ;;  %v356_v3 = vsub.f32 %v452_v7, %v453_v5  ;;  %v327_v31 = vsub.f32 %v442_v40, %v297_v36 }
  0x35   :  { %v325_v23 = vmul.f32 2.0, %v324_v59  ;;  %v272_v13 = vadd.f32 %v271_v12, %v179_v8  ;;  %v151_v18 = vsel %vm149_vm12, %v148_v14, 0.0  ;;  %v241_v38 = vadd.f32 %v240_v27, %v239_v6 }
  0x36   :  { %v315_v16 = vadd.f32 %v314_v58, %v302_v61  ;;  %v349_v61 = vmul.f32 %v348_v28, %v348_v28  ;;  %v357_v19 = vmul.f32 %v356_v3, %v356_v3  ;;  %v243_v20 = vsel %vm242_vm13, %v204_v43, %v150_v47 }
  0x37   :  { %v333_v30 = vmul.f32 %v327_v31, %v327_v31  ;;  %v473_v34 = vmov 0.0   ;;  %vm337_vm15 = vcmp.eq.f32.partialorder %v732_v60, 1.0  ;;  %vm335_vm0 = vcmp.gt.f32.partialorder %v297_v36, %v243_v20 }
  0x38   :  { %v316_v37 = vadd.f32 %v315_v16, %v303_v51  ;;  %v449_v10 = vsel %vm340_vm14, 1.0, %v473_v34  ;;  %v244_v51 = vsel %vm242_vm13, %v241_v38, %v151_v18  ;;  %v358_v33 = vadd.f32 %v357_v19, %v349_v61 }
  0x39   :  { %v361_v39 = vmul.f32 %v449_v10, %v272_v13  ;;  %v448_v53 = vsel %vm337_vm15, 1.0, %v473_v34 }
  0x3a   :  { %v326_v25 = vsub.f32 %v316_v37, %v325_v23 }
  0x3b   :  { %v362_v11 = vmul.f32 0.5, %v361_v39 }
  0x3c   :  { %v331_v21 = vadd.f32 %v330_v1, %v326_v25 }
  0x3e   :  { %v332_v0 = vmul.f32 5.0, %v331_v21 }
  0x40   :  { %v334_v24 = vadd.f32 %v333_v30, %v332_v0 }
  0x42   :  { %v336_v4 = vsel %vm335_vm0, %v334_v24, %v244_v51 }
  0x43   :  { %v359_v17 = vadd.f32 %v358_v33, %v336_v4 }
  0x45   :  { %v360_v40 = vmul.f32 %v448_v53, %v359_v17 }
  0x47   :  { %v363_v41 = vadd.f32 %v362_v11, %v360_v40 }
  0x49   :  { %371 = vst [vmem:[%s818_s2] sm:$0xff] %v363_v41 }

</bundles_post_ra>
